<compile_context>
chip_gen: v7x
topology: tpu7x:2x2x1
jax: 0.10.0
libtpu: 0.0.40
codegen_flags: <defaults>
</compile_context>

<pallas_src>
import functools

import jax
import jax.numpy as jnp
from jax.experimental import pallas as pl
from jax.experimental.pallas import tpu as pltpu


def _round_up(x, m):
    return (x + m - 1) // m * m


def _lane_mask(P, Wo, Q, Qp):
    """(1, Qp) f32 mask of valid output lanes (pitch-P flattening; junk cols / tail = 0)."""
    lane = jax.lax.broadcasted_iota(jnp.int32, (1, Qp), 1)
    return jnp.logical_and(lane % P < Wo, lane < Q).astype(jnp.float32)


# --------------------------------------------------------------------------------------
# pass 1: conv1 + BN1 partial sums (per image)
# --------------------------------------------------------------------------------------
def _conv1_stats_kernel(*refs, stride, P, Wo, Q, Qp):
    n_x = 1 if stride == 1 else 4          # stride 2 uses 4 parity-decomposed padded inputs
    x_refs = refs[:n_x]
    w1_ref = refs[n_x]                     # (9, Cout, Cin) bf16, per-tap weights
    y1_ref = refs[n_x + 1]                 # (1, Cout, Qp) f32
    st_ref = refs[n_x + 2]                 # (1, Cout, 2)  f32: [sum, sum of squares]
    Cout = w1_ref.shape[1]

    mask = _lane_mask(P, Wo, Q, Qp)
    xb = [x_refs[i][0].astype(jnp.bfloat16) for i in range(n_x)]   # bf16 MXU operands
    acc = jnp.zeros((Cout, Qp), jnp.float32)
    for kh in range(3):
        for kw in range(3):
            t = kh * 3 + kw
            if stride == 1:
                src = xb[0][:, kh * P + kw: kh * P + kw + Qp]
            else:
                off = (kh // 2) * P + (kw // 2)
                src = xb[2 * (kh % 2) + (kw % 2)][:, off: off + Qp]
            acc = acc + jnp.dot(w1_ref[t], src, preferred_element_type=jnp.float32)
    y = acc * mask                          # zero junk lanes (also masks the BN sums)
    y1_ref[0] = y
    st_ref[0, :, 0:1] = jnp.sum(y, axis=-1, keepdims=True)
    st_ref[0, :, 1:2] = jnp.sum(y * y, axis=-1, keepdims=True)


# --------------------------------------------------------------------------------------
# pass 2: BN1 affine + relu + conv2 + BN2 partial sums (per image)
# --------------------------------------------------------------------------------------
def _bn1_conv2_stats_kernel(y1_ref, sc1_ref, sh1_ref, w2_ref, y2_ref, st_ref, ypad_ref,
                            *, P, Wo, Q, Qp, pad_lo, pad_hi):
    Cout = y1_ref.shape[1]
    mask = _lane_mask(P, Wo, Q, Qp)
    # BN1 affine + relu; re-mask (the affine shift makes junk lanes non-zero again).
    y1 = jnp.maximum(sc1_ref[...] * y1_ref[0] + sh1_ref[...], 0.0) * mask
    # conv2 without an im2col slab: one aligned store of y1 into a zero-padded scratch and
    # 9 matmuls on lane-offset views of it.  Row zero-padding = the two zero strips; column
    # zero-padding comes for free from the masked junk columns of y1 itself.
    ypad_ref[:, 0:pad_lo] = jnp.zeros((Cout, pad_lo), jnp.bfloat16)
    ypad_ref[:, pad_lo + Qp: pad_lo + Qp + pad_hi] = jnp.zeros((Cout, pad_hi), jnp.bfloat16)
    ypad_ref[:, pad_lo: pad_lo + Qp] = y1.astype(jnp.bfloat16)     # aligned full-width store
    acc = jnp.zeros((Cout, Qp), jnp.float32)
    for kh in range(3):
        for kw in range(3):
            t = kh * 3 + kw
            s = (kh - 1) * P + (kw - 1)
            src = ypad_ref[:, pad_lo + s: pad_lo + s + Qp]
            acc = acc + jnp.dot(w2_ref[t], src, preferred_element_type=jnp.float32)
    y = acc * mask
    y2_ref[0] = y
    st_ref[0, :, 0:1] = jnp.sum(y, axis=-1, keepdims=True)
    st_ref[0, :, 1:2] = jnp.sum(y * y, axis=-1, keepdims=True)


# --------------------------------------------------------------------------------------
# pass 3: BN2 affine + shortcut + relu (per image)
# --------------------------------------------------------------------------------------
def _bn2_shortcut_kernel(*refs, stride, identity, P, Wo, Q, Qp, ch_res):
    n_x = 1 if stride == 1 else 4
    x_refs = refs[:n_x]
    y2_ref, sc2_ref, sh2_ref = refs[n_x: n_x + 3]
    out_ref = refs[n_x + 3]
    Cin = x_refs[0].shape[1]

    mask = _lane_mask(P, Wo, Q, Qp)
    y2 = sc2_ref[...] * y2_ref[0] + sh2_ref[...]
    if identity:
        # identity shortcut: interior of the padded input, one contiguous lane view
        z = x_refs[0][0, :, P + 1: P + 1 + Qp]
        out_ref[0] = jnp.maximum(y2 + z, 0.0) * mask
    else:
        # avg_pool2d(x, 2, 2): 4 contiguous lane views of the parity-split padded input
        z = 0.25 * (x_refs[3][0, :, 0:Qp]
                    + x_refs[2][0, :, 1:1 + Qp]
                    + x_refs[1][0, :, P:P + Qp]
                    + x_refs[0][0, :, P + 1:P + 1 + Qp])
        # "option A" channel padding as a direct sublane-subrange store
        out_ref[0] = jnp.maximum(y2, 0.0) * mask
        out_ref[0, ch_res:ch_res + Cin, :] = \
            jnp.maximum(y2[ch_res:ch_res + Cin, :] + z, 0.0) * mask


# --------------------------------------------------------------------------------------
# wrapper
# --------------------------------------------------------------------------------------
def _bn_affine(stats, gamma, beta, count, eps):
    """Finalize training-mode BN from per-image partial sums -> (scale, shift) (Cout, 1)."""
    s = jnp.sum(stats.astype(jnp.float32), axis=0)            # (Cout, 2)
    mean = s[:, 0] / count
    var = jnp.maximum(s[:, 1] / count - mean * mean, 0.0)     # clamp one-pass variance
    scale = gamma * jax.lax.rsqrt(var + eps)
    shift = beta - mean * scale
    return scale.reshape(-1, 1), shift.reshape(-1, 1)


def make_params(key, in_chann, chann):
    ks = jax.random.split(key, 8)
    return {
        'w1': 0.1 * jax.random.normal(ks[0], (chann, in_chann, 3, 3), jnp.float32),
        'b1': 0.1 * jax.random.normal(ks[1], (chann,), jnp.float32),
        'g1': 1.0 + 0.1 * jax.random.normal(ks[2], (chann,), jnp.float32),
        'be1': 0.1 * jax.random.normal(ks[3], (chann,), jnp.float32),
        'w2': 0.1 * jax.random.normal(ks[4], (chann, chann, 3, 3), jnp.float32),
        'b2': 0.1 * jax.random.normal(ks[5], (chann,), jnp.float32),
        'g2': 1.0 + 0.1 * jax.random.normal(ks[6], (chann,), jnp.float32),
        'be2': 0.1 * jax.random.normal(ks[7], (chann,), jnp.float32),
    }


def resblock_a_forward(x_nchw, params, stride, eps=1e-5):
    N, Cin, H, W = x_nchw.shape
    Cout = params['w1'].shape[0]
    Ho = (H - 1) // stride + 1
    Wo = (W - 1) // stride + 1
    identity = (stride == 1 and Cin == Cout)
    if stride == 1:
        assert Cin == Cout, "stride-1 ResBlockA requires matching channels"
    else:
        assert stride == 2 and H % 2 == 0 and W % 2 == 0

    P = Wo + 2                              # flat row pitch (2 junk cols per row)
    Q = (Ho - 1) * P + Wo                   # last valid lane + 1
    Qp = _round_up(Ho * P, 128)             # 128-aligned per-image lane extent
    Lin = _round_up(Qp + 2 * P + 2, 128)    # flat input length covering every tap view
    pad_lo = _round_up(P + 1, 128)          # aligned zero strips around y1 in pass 2
    pad_hi = pad_lo
    count = float(N * Ho * Wo)

    x = x_nchw.astype(jnp.float32)
    xp = jnp.pad(x, ((0, 0), (0, 0), (1, 1), (1, 1)))         # conv zero padding = 1
    if stride == 1:
        flat = xp.reshape(N, Cin, (H + 2) * (W + 2))          # pitch P == W + 2
        x_in = [jnp.pad(flat, ((0, 0), (0, 0), (0, Lin - flat.shape[2])))]
    else:
        # parity-decompose so every stride-2 tap / pool element is a contiguous lane view
        x_in = []
        for a in range(2):
            for b in range(2):
                par = xp[:, :, a::2, b::2]
                par = jnp.pad(par, ((0, 0), (0, 0), (0, 0), (0, P - par.shape[3])))
                flat = par.reshape(N, Cin, par.shape[2] * P)
                x_in.append(jnp.pad(flat, ((0, 0), (0, 0), (0, Lin - flat.shape[2]))))

    # PyTorch conv weight (Cout, Cin, 3, 3) -> per-tap (9, Cout, Cin), bf16 MXU operands.
    w1 = jnp.transpose(params['w1'], (2, 3, 0, 1)).reshape(9, Cout, Cin).astype(jnp.bfloat16)
    w2 = jnp.transpose(params['w2'], (2, 3, 0, 1)).reshape(9, Cout, Cout).astype(jnp.bfloat16)
    # conv biases b1/b2 intentionally unused: they cancel exactly in training-mode BN.

    cparams = pltpu.CompilerParams(
        dimension_semantics=("parallel",),
        vmem_limit_bytes=32 * 1024 * 1024,  # per-image tiles are small; explicit headroom
    )
    x_specs = [pl.BlockSpec((1, Cin, Lin), lambda n: (n, 0, 0)) for _ in x_in]
    act_spec = pl.BlockSpec((1, Cout, Qp), lambda n: (n, 0, 0))
    st_spec = pl.BlockSpec((1, Cout, 2), lambda n: (n, 0, 0))
    vec_spec = pl.BlockSpec((Cout, 1), lambda n: (0, 0))

    # ---- pass 1: conv1 + BN1 partial sums --------------------------------------------
    y1_raw, st1 = pl.pallas_call(
        functools.partial(_conv1_stats_kernel, stride=stride, P=P, Wo=Wo, Q=Q, Qp=Qp),
        grid=(N,),
        in_specs=x_specs + [pl.BlockSpec((9, Cout, Cin), lambda n: (0, 0, 0))],
        out_specs=[act_spec, st_spec],
        out_shape=[jax.ShapeDtypeStruct((N, Cout, Qp), jnp.float32),
                   jax.ShapeDtypeStruct((N, Cout, 2), jnp.float32)],
        compiler_params=cparams,
    )(*x_in, w1)
    scale1, shift1 = _bn_affine(st1, params['g1'], params['be1'], count, eps)

    # ---- pass 2: BN1 + relu + conv2 + BN2 partial sums --------------------------------
    y2_raw, st2 = pl.pallas_call(
        functools.partial(_bn1_conv2_stats_kernel, P=P, Wo=Wo, Q=Q, Qp=Qp,
                          pad_lo=pad_lo, pad_hi=pad_hi),
        grid=(N,),
        in_specs=[act_spec, vec_spec, vec_spec,
                  pl.BlockSpec((9, Cout, Cout), lambda n: (0, 0, 0))],
        out_specs=[act_spec, st_spec],
        out_shape=[jax.ShapeDtypeStruct((N, Cout, Qp), jnp.float32),
                   jax.ShapeDtypeStruct((N, Cout, 2), jnp.float32)],
        scratch_shapes=[pltpu.VMEM((Cout, pad_lo + Qp + pad_hi), jnp.bfloat16)],
        compiler_params=cparams,
    )(y1_raw, scale1, shift1, w2)
    scale2, shift2 = _bn_affine(st2, params['g2'], params['be2'], count, eps)

    # ---- pass 3: BN2 + shortcut + relu -------------------------------------------------
    out = pl.pallas_call(
        functools.partial(_bn2_shortcut_kernel, stride=stride, identity=identity,
                          P=P, Wo=Wo, Q=Q, Qp=Qp, ch_res=(Cout - Cin) // 2),
        grid=(N,),
        in_specs=x_specs + [act_spec, vec_spec, vec_spec],
        out_specs=act_spec,
        out_shape=jax.ShapeDtypeStruct((N, Cout, Qp), jnp.float32),
        compiler_params=cparams,
    )(*x_in, y2_raw, scale2, shift2)

    # lanes are already NCHW-ordered (pitch P); drop junk columns / tail lanes.
    return out[:, :, :Ho * P].reshape(N, Cout, Ho, P)[:, :, :, :Wo]


def resblock_a_reference(x, params, stride):
    """Plain-JAX reference replicating the PyTorch forward (training-mode BN)."""
    def conv(x, w, b, s):
        y = jax.lax.conv_general_dilated(
            x, w, window_strides=(s, s), padding=((1, 1), (1, 1)),
            dimension_numbers=('NCHW', 'OIHW', 'NCHW'),
            precision=jax.lax.Precision.HIGHEST)
        return y + b[None, :, None, None]

    def bn(y, g, be):
        mean = jnp.mean(y, axis=(0, 2, 3), keepdims=True)
        var = jnp.mean((y - mean) ** 2, axis=(0, 2, 3), keepdims=True)
        return ((y - mean) / jnp.sqrt(var + 1e-5)) * g[None, :, None, None] \
            + be[None, :, None, None]

    y = jax.nn.relu(bn(conv(x, params['w1'], params['b1'], stride),
                       params['g1'], params['be1']))
    y = bn(conv(y, params['w2'], params['b2'], 1), params['g2'], params['be2'])
    if x.shape == y.shape:
        z = x
    else:
        z = jax.lax.reduce_window(x, 0.0, jax.lax.add,
                                  (1, 1, 2, 2), (1, 1, 2, 2), 'VALID') / 4.0
        ch = (y.shape[1] - x.shape[1]) // 2
        z = jnp.pad(z, ((0, 0), (ch, ch), (0, 0), (0, 0)))
    return jax.nn.relu(z + y)


if __name__ == "__main__":
    key = jax.random.PRNGKey(0)
    kx, kp1, kp2 = jax.random.split(key, 3)

    # Case 1: "option A" projection shortcut (stride=2, channels 16 -> 32), matching the
    # ResNet-110 stage-transition channel counts at reduced batch / spatial size.
    x = jax.random.normal(kx, (2, 16, 16, 16), jnp.float32)
    p1 = make_params(kp1, 16, 32)
    out1 = resblock_a_forward(x, p1, stride=2)
    jax.block_until_ready(out1)
    ref1 = resblock_a_reference(x, p1, 2)
    assert out1.shape == (2, 32, 8, 8), out1.shape
    # bf16 MXU operands (f32 accumulation / BN math) -> slightly loose tolerance.
    assert jnp.allclose(out1, ref1, atol=4e-2, rtol=4e-2), \
        float(jnp.max(jnp.abs(out1 - ref1)))

    # Case 2: identity shortcut (stride=1, channels 16 -> 16)
    p2 = make_params(kp2, 16, 16)
    out2 = resblock_a_forward(x, p2, stride=1)
    jax.block_until_ready(out2)
    ref2 = resblock_a_reference(x, p2, 1)
    assert out2.shape == (2, 16, 16, 16), out2.shape
    assert jnp.allclose(out2, ref2, atol=4e-2, rtol=4e-2), \
        float(jnp.max(jnp.abs(out2 - ref2)))

    print("KERNEL_OK")
</pallas_src>

<mosaic_0001>
module attributes {stable_mosaic.version = 11 : i64} {
  func.func @_conv1_stats_kernel(%arg0: i32, %arg1: memref<1x16x256xf32, #tpu.memory_space<vmem>>, %arg2: memref<1x16x256xf32, #tpu.memory_space<vmem>>, %arg3: memref<1x16x256xf32, #tpu.memory_space<vmem>>, %arg4: memref<1x16x256xf32, #tpu.memory_space<vmem>>, %arg5: memref<9x32x16xbf16, #tpu.memory_space<vmem>>, %arg6: memref<1x32x128xf32, #tpu.memory_space<vmem>>, %arg7: memref<1x32x2xf32, #tpu.memory_space<vmem>>) attributes {dimension_semantics = [#tpu.dimension_semantics<parallel>], iteration_bounds = array<i64: 2>, scalar_prefetch = 0 : i64, scratch_operands = 0 : i64, tpu.core_type = #tpu.core_type<tc>, window_params = [{transform_indices = @transform_0, window_bounds = array<i64: 1, 16, 256>}, {transform_indices = @transform_1, window_bounds = array<i64: 1, 16, 256>}, {transform_indices = @transform_2, window_bounds = array<i64: 1, 16, 256>}, {transform_indices = @transform_3, window_bounds = array<i64: 1, 16, 256>}, {pipeline_mode = #tpu.pipeline_mode<synchronous>, transform_indices = @transform_4, window_bounds = array<i64: 9, 32, 16>}, {transform_indices = @transform_5, window_bounds = array<i64: 1, 32, 128>}, {transform_indices = @transform_6, window_bounds = array<i64: 1, 32, 2>}]} {
    %0 = tpu.iota {dimensions = array<i32: 1>} : vector<1x128xi32>
    %c10_i32 = arith.constant 10 : i32
    %c0_i32 = arith.constant 0 : i32
    %1 = arith.cmpi eq, %c10_i32, %c0_i32 : i32
    %c1_i32 = arith.constant 1 : i32
    %2 = arith.select %1, %c1_i32, %c10_i32 : i32
    %3 = vector.broadcast %2 : i32 to vector<1x128xi32>
    %4 = arith.remsi %0, %3 : vector<1x128xi32>
    %c0_i32_0 = arith.constant 0 : i32
    %5 = vector.broadcast %c0_i32_0 : i32 to vector<1x128xi32>
    %6 = arith.cmpi ne, %4, %5 : vector<1x128xi32>
    %c0_i32_1 = arith.constant 0 : i32
    %7 = vector.broadcast %c0_i32_1 : i32 to vector<1x128xi32>
    %8 = arith.cmpi slt, %4, %7 : vector<1x128xi32>
    %c0_i32_2 = arith.constant 0 : i32
    %9 = arith.cmpi slt, %2, %c0_i32_2 : i32
    %10 = vector.broadcast %9 : i1 to vector<1x128xi1>
    %11 = vector.broadcast %10 : vector<1x128xi1> to vector<1x128xi1>
    %12 = arith.xori %8, %11 : vector<1x128xi1>
    %13 = arith.andi %12, %6 : vector<1x128xi1>
    %14 = vector.broadcast %2 : i32 to vector<1x128xi32>
    %15 = arith.addi %4, %14 : vector<1x128xi32>
    %16 = arith.select %13, %15, %4 : vector<1x128xi1>, vector<1x128xi32>
    %c8_i32 = arith.constant 8 : i32
    %17 = vector.broadcast %c8_i32 : i32 to vector<1x128xi32>
    %18 = arith.cmpi slt, %16, %17 : vector<1x128xi32>
    %c78_i32 = arith.constant 78 : i32
    %19 = vector.broadcast %c78_i32 : i32 to vector<1x128xi32>
    %20 = arith.cmpi slt, %0, %19 : vector<1x128xi32>
    %21 = arith.andi %18, %20 : vector<1x128xi1>
    %22 = arith.extui %21 : vector<1x128xi1> to vector<1x128xi32>
    %23 = arith.sitofp %22 : vector<1x128xi32> to vector<1x128xf32>
    %c0 = arith.constant 0 : index
    %c0_3 = arith.constant 0 : index
    %c0_4 = arith.constant 0 : index
    %24 = vector.load %arg1[%c0, %c0_3, %c0_4] : memref<1x16x256xf32, #tpu.memory_space<vmem>>, vector<1x16x256xf32>
    %25 = vector.shape_cast %24 : vector<1x16x256xf32> to vector<16x256xf32>
    %26 = arith.truncf %25 : vector<16x256xf32> to vector<16x256xbf16>
    %c0_5 = arith.constant 0 : index
    %c0_6 = arith.constant 0 : index
    %c0_7 = arith.constant 0 : index
    %27 = vector.load %arg2[%c0_5, %c0_6, %c0_7] : memref<1x16x256xf32, #tpu.memory_space<vmem>>, vector<1x16x256xf32>
    %28 = vector.shape_cast %27 : vector<1x16x256xf32> to vector<16x256xf32>
    %29 = arith.truncf %28 : vector<16x256xf32> to vector<16x256xbf16>
    %c0_8 = arith.constant 0 : index
    %c0_9 = arith.constant 0 : index
    %c0_10 = arith.constant 0 : index
    %30 = vector.load %arg3[%c0_8, %c0_9, %c0_10] : memref<1x16x256xf32, #tpu.memory_space<vmem>>, vector<1x16x256xf32>
    %31 = vector.shape_cast %30 : vector<1x16x256xf32> to vector<16x256xf32>
    %32 = arith.truncf %31 : vector<16x256xf32> to vector<16x256xbf16>
    %c0_11 = arith.constant 0 : index
    %c0_12 = arith.constant 0 : index
    %c0_13 = arith.constant 0 : index
    %33 = vector.load %arg4[%c0_11, %c0_12, %c0_13] : memref<1x16x256xf32, #tpu.memory_space<vmem>>, vector<1x16x256xf32>
    %34 = vector.shape_cast %33 : vector<1x16x256xf32> to vector<16x256xf32>
    %35 = arith.truncf %34 : vector<16x256xf32> to vector<16x256xbf16>
    %cst = arith.constant 0.000000e+00 : f32
    %36 = vector.broadcast %cst : f32 to vector<32x128xf32>
    %37 = vector.extract_strided_slice %26 {offsets = [0, 0], sizes = [16, 128], strides = [1, 1]} : vector<16x256xbf16> to vector<16x128xbf16>
    %c0_14 = arith.constant 0 : index
    %c0_15 = arith.constant 0 : index
    %c0_16 = arith.constant 0 : index
    %38 = vector.load %arg5[%c0_14, %c0_15, %c0_16] : memref<9x32x16xbf16, #tpu.memory_space<vmem>>, vector<1x32x16xbf16>
    %39 = vector.shape_cast %38 : vector<1x32x16xbf16> to vector<32x16xbf16>
    %cst_17 = arith.constant dense<0.000000e+00> : vector<32x128xf32>
    %40 = tpu.matmul %39, %37, %cst_17 {dimension_numbers = #tpu.dot_dimension_numbers<[1], [0], [0], [1], [0, 0, 1, 1], [], []>} : vector<32x16xbf16>, vector<16x128xbf16>, vector<32x128xf32> -> vector<32x128xf32>
    %41 = arith.addf %36, %40 : vector<32x128xf32>
    %42 = vector.extract_strided_slice %29 {offsets = [0, 0], sizes = [16, 128], strides = [1, 1]} : vector<16x256xbf16> to vector<16x128xbf16>
    %c1 = arith.constant 1 : index
    %c0_18 = arith.constant 0 : index
    %c0_19 = arith.constant 0 : index
    %43 = vector.load %arg5[%c1, %c0_18, %c0_19] : memref<9x32x16xbf16, #tpu.memory_space<vmem>>, vector<1x32x16xbf16>
    %44 = vector.shape_cast %43 : vector<1x32x16xbf16> to vector<32x16xbf16>
    %cst_20 = arith.constant dense<0.000000e+00> : vector<32x128xf32>
    %45 = tpu.matmul %44, %42, %cst_20 {dimension_numbers = #tpu.dot_dimension_numbers<[1], [0], [0], [1], [0, 0, 1, 1], [], []>} : vector<32x16xbf16>, vector<16x128xbf16>, vector<32x128xf32> -> vector<32x128xf32>
    %46 = arith.addf %41, %45 : vector<32x128xf32>
    %47 = vector.extract_strided_slice %26 {offsets = [0, 1], sizes = [16, 128], strides = [1, 1]} : vector<16x256xbf16> to vector<16x128xbf16>
    %c2 = arith.constant 2 : index
    %c0_21 = arith.constant 0 : index
    %c0_22 = arith.constant 0 : index
    %48 = vector.load %arg5[%c2, %c0_21, %c0_22] : memref<9x32x16xbf16, #tpu.memory_space<vmem>>, vector<1x32x16xbf16>
    %49 = vector.shape_cast %48 : vector<1x32x16xbf16> to vector<32x16xbf16>
    %cst_23 = arith.constant dense<0.000000e+00> : vector<32x128xf32>
    %50 = tpu.matmul %49, %47, %cst_23 {dimension_numbers = #tpu.dot_dimension_numbers<[1], [0], [0], [1], [0, 0, 1, 1], [], []>} : vector<32x16xbf16>, vector<16x128xbf16>, vector<32x128xf32> -> vector<32x128xf32>
    %51 = arith.addf %46, %50 : vector<32x128xf32>
    %52 = vector.extract_strided_slice %32 {offsets = [0, 0], sizes = [16, 128], strides = [1, 1]} : vector<16x256xbf16> to vector<16x128xbf16>
    %c3 = arith.constant 3 : index
    %c0_24 = arith.constant 0 : index
    %c0_25 = arith.constant 0 : index
    %53 = vector.load %arg5[%c3, %c0_24, %c0_25] : memref<9x32x16xbf16, #tpu.memory_space<vmem>>, vector<1x32x16xbf16>
    %54 = vector.shape_cast %53 : vector<1x32x16xbf16> to vector<32x16xbf16>
    %cst_26 = arith.constant dense<0.000000e+00> : vector<32x128xf32>
    %55 = tpu.matmul %54, %52, %cst_26 {dimension_numbers = #tpu.dot_dimension_numbers<[1], [0], [0], [1], [0, 0, 1, 1], [], []>} : vector<32x16xbf16>, vector<16x128xbf16>, vector<32x128xf32> -> vector<32x128xf32>
    %56 = arith.addf %51, %55 : vector<32x128xf32>
    %57 = vector.extract_strided_slice %35 {offsets = [0, 0], sizes = [16, 128], strides = [1, 1]} : vector<16x256xbf16> to vector<16x128xbf16>
    %c4 = arith.constant 4 : index
    %c0_27 = arith.constant 0 : index
    %c0_28 = arith.constant 0 : index
    %58 = vector.load %arg5[%c4, %c0_27, %c0_28] : memref<9x32x16xbf16, #tpu.memory_space<vmem>>, vector<1x32x16xbf16>
    %59 = vector.shape_cast %58 : vector<1x32x16xbf16> to vector<32x16xbf16>
    %cst_29 = arith.constant dense<0.000000e+00> : vector<32x128xf32>
    %60 = tpu.matmul %59, %57, %cst_29 {dimension_numbers = #tpu.dot_dimension_numbers<[1], [0], [0], [1], [0, 0, 1, 1], [], []>} : vector<32x16xbf16>, vector<16x128xbf16>, vector<32x128xf32> -> vector<32x128xf32>
    %61 = arith.addf %56, %60 : vector<32x128xf32>
    %62 = vector.extract_strided_slice %32 {offsets = [0, 1], sizes = [16, 128], strides = [1, 1]} : vector<16x256xbf16> to vector<16x128xbf16>
    %c5 = arith.constant 5 : index
    %c0_30 = arith.constant 0 : index
    %c0_31 = arith.constant 0 : index
    %63 = vector.load %arg5[%c5, %c0_30, %c0_31] : memref<9x32x16xbf16, #tpu.memory_space<vmem>>, vector<1x32x16xbf16>
    %64 = vector.shape_cast %63 : vector<1x32x16xbf16> to vector<32x16xbf16>
    %cst_32 = arith.constant dense<0.000000e+00> : vector<32x128xf32>
    %65 = tpu.matmul %64, %62, %cst_32 {dimension_numbers = #tpu.dot_dimension_numbers<[1], [0], [0], [1], [0, 0, 1, 1], [], []>} : vector<32x16xbf16>, vector<16x128xbf16>, vector<32x128xf32> -> vector<32x128xf32>
    %66 = arith.addf %61, %65 : vector<32x128xf32>
    %67 = vector.extract_strided_slice %26 {offsets = [0, 10], sizes = [16, 128], strides = [1, 1]} : vector<16x256xbf16> to vector<16x128xbf16>
    %c6 = arith.constant 6 : index
    %c0_33 = arith.constant 0 : index
    %c0_34 = arith.constant 0 : index
    %68 = vector.load %arg5[%c6, %c0_33, %c0_34] : memref<9x32x16xbf16, #tpu.memory_space<vmem>>, vector<1x32x16xbf16>
    %69 = vector.shape_cast %68 : vector<1x32x16xbf16> to vector<32x16xbf16>
    %cst_35 = arith.constant dense<0.000000e+00> : vector<32x128xf32>
    %70 = tpu.matmul %69, %67, %cst_35 {dimension_numbers = #tpu.dot_dimension_numbers<[1], [0], [0], [1], [0, 0, 1, 1], [], []>} : vector<32x16xbf16>, vector<16x128xbf16>, vector<32x128xf32> -> vector<32x128xf32>
    %71 = arith.addf %66, %70 : vector<32x128xf32>
    %72 = vector.extract_strided_slice %29 {offsets = [0, 10], sizes = [16, 128], strides = [1, 1]} : vector<16x256xbf16> to vector<16x128xbf16>
    %c7 = arith.constant 7 : index
    %c0_36 = arith.constant 0 : index
    %c0_37 = arith.constant 0 : index
    %73 = vector.load %arg5[%c7, %c0_36, %c0_37] : memref<9x32x16xbf16, #tpu.memory_space<vmem>>, vector<1x32x16xbf16>
    %74 = vector.shape_cast %73 : vector<1x32x16xbf16> to vector<32x16xbf16>
    %cst_38 = arith.constant dense<0.000000e+00> : vector<32x128xf32>
    %75 = tpu.matmul %74, %72, %cst_38 {dimension_numbers = #tpu.dot_dimension_numbers<[1], [0], [0], [1], [0, 0, 1, 1], [], []>} : vector<32x16xbf16>, vector<16x128xbf16>, vector<32x128xf32> -> vector<32x128xf32>
    %76 = arith.addf %71, %75 : vector<32x128xf32>
    %77 = vector.extract_strided_slice %26 {offsets = [0, 11], sizes = [16, 128], strides = [1, 1]} : vector<16x256xbf16> to vector<16x128xbf16>
    %c8 = arith.constant 8 : index
    %c0_39 = arith.constant 0 : index
    %c0_40 = arith.constant 0 : index
    %78 = vector.load %arg5[%c8, %c0_39, %c0_40] : memref<9x32x16xbf16, #tpu.memory_space<vmem>>, vector<1x32x16xbf16>
    %79 = vector.shape_cast %78 : vector<1x32x16xbf16> to vector<32x16xbf16>
    %cst_41 = arith.constant dense<0.000000e+00> : vector<32x128xf32>
    %80 = tpu.matmul %79, %77, %cst_41 {dimension_numbers = #tpu.dot_dimension_numbers<[1], [0], [0], [1], [0, 0, 1, 1], [], []>} : vector<32x16xbf16>, vector<16x128xbf16>, vector<32x128xf32> -> vector<32x128xf32>
    %81 = arith.addf %76, %80 : vector<32x128xf32>
    %82 = vector.broadcast %23 : vector<1x128xf32> to vector<32x128xf32>
    %83 = arith.mulf %81, %82 : vector<32x128xf32>
    %c0_42 = arith.constant 0 : index
    %c0_43 = arith.constant 0 : index
    %c0_44 = arith.constant 0 : index
    %84 = vector.load %arg6[%c0_42, %c0_43, %c0_44] : memref<1x32x128xf32, #tpu.memory_space<vmem>>, vector<1x32x128xf32>
    %85 = vector.shape_cast %84 : vector<1x32x128xf32> to vector<32x128xf32>
    %86 = vector.shape_cast %83 : vector<32x128xf32> to vector<1x32x128xf32>
    tpu.vector_store %arg6[%c0_42, %c0_43, %c0_44], %86 {strides = array<i32>} : memref<1x32x128xf32, #tpu.memory_space<vmem>>, vector<1x32x128xf32>,
    %cst_45 = arith.constant dense<0.000000e+00> : vector<32xf32>
    %87 = vector.multi_reduction <add>, %83, %cst_45 [1] : vector<32x128xf32> to vector<32xf32>
    %88 = vector.shape_cast %87 : vector<32xf32> to vector<32x1xf32>
    %c0_46 = arith.constant 0 : index
    %c0_47 = arith.constant 0 : index
    %c0_48 = arith.constant 0 : index
    %89 = vector.load %arg7[%c0_46, %c0_47, %c0_48] : memref<1x32x2xf32, #tpu.memory_space<vmem>>, vector<1x32x1xf32>
    %90 = vector.shape_cast %89 : vector<1x32x1xf32> to vector<32x1xf32>
    %91 = vector.shape_cast %88 : vector<32x1xf32> to vector<1x32x1xf32>
    tpu.vector_store %arg7[%c0_46, %c0_47, %c0_48], %91 {strides = array<i32>} : memref<1x32x2xf32, #tpu.memory_space<vmem>>, vector<1x32x1xf32>,
    %92 = arith.mulf %83, %83 : vector<32x128xf32>
    %cst_49 = arith.constant dense<0.000000e+00> : vector<32xf32>
    %93 = vector.multi_reduction <add>, %92, %cst_49 [1] : vector<32x128xf32> to vector<32xf32>
    %94 = vector.shape_cast %93 : vector<32xf32> to vector<32x1xf32>
    %c0_50 = arith.constant 0 : index
    %c0_51 = arith.constant 0 : index
    %c1_52 = arith.constant 1 : index
    %95 = vector.load %arg7[%c0_50, %c0_51, %c1_52] : memref<1x32x2xf32, #tpu.memory_space<vmem>>, vector<1x32x1xf32>
    %96 = vector.shape_cast %95 : vector<1x32x1xf32> to vector<32x1xf32>
    %97 = vector.shape_cast %94 : vector<32x1xf32> to vector<1x32x1xf32>
    tpu.vector_store %arg7[%c0_50, %c0_51, %c1_52], %97 {strides = array<i32>} : memref<1x32x2xf32, #tpu.memory_space<vmem>>, vector<1x32x1xf32>,
    return
  }
  func.func @transform_0(%arg0: i32) -> (i32, i32, i32) {
    %c0_i32 = arith.constant 0 : i32
    %c0_i32_0 = arith.constant 0 : i32
    %c0_i32_1 = arith.constant 0 : i32
    return %arg0, %c0_i32, %c0_i32_0 : i32, i32, i32
  }
  func.func @transform_1(%arg0: i32) -> (i32, i32, i32) {
    %c0_i32 = arith.constant 0 : i32
    %c0_i32_0 = arith.constant 0 : i32
    %c0_i32_1 = arith.constant 0 : i32
    return %arg0, %c0_i32, %c0_i32_0 : i32, i32, i32
  }
  func.func @transform_2(%arg0: i32) -> (i32, i32, i32) {
    %c0_i32 = arith.constant 0 : i32
    %c0_i32_0 = arith.constant 0 : i32
    %c0_i32_1 = arith.constant 0 : i32
    return %arg0, %c0_i32, %c0_i32_0 : i32, i32, i32
  }
  func.func @transform_3(%arg0: i32) -> (i32, i32, i32) {
    %c0_i32 = arith.constant 0 : i32
    %c0_i32_0 = arith.constant 0 : i32
    %c0_i32_1 = arith.constant 0 : i32
    return %arg0, %c0_i32, %c0_i32_0 : i32, i32, i32
  }
  func.func @transform_4(%arg0: i32) -> (i32, i32, i32) {
    %c0_i32 = arith.constant 0 : i32
    %c0_i32_0 = arith.constant 0 : i32
    %c0_i32_1 = arith.constant 0 : i32
    %c0_i32_2 = arith.constant 0 : i32
    return %c0_i32, %c0_i32_0, %c0_i32_1 : i32, i32, i32
  }
  func.func @transform_5(%arg0: i32) -> (i32, i32, i32) {
    %c0_i32 = arith.constant 0 : i32
    %c0_i32_0 = arith.constant 0 : i32
    %c0_i32_1 = arith.constant 0 : i32
    return %arg0, %c0_i32, %c0_i32_0 : i32, i32, i32
  }
  func.func @transform_6(%arg0: i32) -> (i32, i32, i32) {
    %c0_i32 = arith.constant 0 : i32
    %c0_i32_0 = arith.constant 0 : i32
    %c0_i32_1 = arith.constant 0 : i32
    return %arg0, %c0_i32, %c0_i32_0 : i32, i32, i32
  }
}

</mosaic_0001>

<bundles_post_ra>
// kernel: tpu_custom_call.1
= control target key start
LH: loop header
LB: loop body
LE: loop exit
PB: predicated region body
PF: predicated region fallthrough
CT: control target
= control target key end

     0   :  { %12 = vsyncpa [#allocation3], 0  ;;  %s1987_s0 = inlined_call_operand.vmem [shape: f32[2,16,256], index: 0, kind: input, shape index: {}]   ;;  %s1988_s1 = inlined_call_operand.vmem [shape: f32[2,16,256], index: 1, kind: input, shape index: {}]   ;;  %s1989_s2 = inlined_call_operand.vmem [shape: f32[2,16,256], index: 2, kind: input, shape index: {}]   ;;  %s1990_s3 = inlined_call_operand.hbm [shape: f32[2,16,256], index: 3, kind: input, shape index: {}]   ;;  %s1991_s4 = inlined_call_operand.vmem [shape: bf16[9,32,16], index: 4, kind: input, shape index: {}]   ;;  %s1992_s5 = inlined_call_operand.hbm [shape: f32[2,32,128], index: 5, kind: output, shape index: {0}]   ;;  %s1993_s6 = inlined_call_operand.vmem [shape: f32[2,32,2], index: 6, kind: output, shape index: {1}]  }
   0x1   :  { %14 = vsyncpa [#allocation3 + $0x1], 0 }
   0x2   :  { %15 = vsyncpa [#allocation4], 0 }
   0x3   :  { %17 = vsyncpa [#allocation4 + $0x1], 0  ;;  %s1706_s21 = smov 0   ;;  %s1708_s22 = smov 0  }
   0x4   :  { %s1710_s23 = smov 0   ;;  %s1712_s24 = smov 0  }
   0x5 LB: > { %s1727_s25 = sadd.s32 4294967295, %s1659_s24   ;;  %s1279_s26 = sadd.s32 4294967294, %s1659_s24   ;;  %s1659_s24 = sphi %s1712_s24, %s2006_s24   ;;  %s1655_s23 = sphi %s1710_s23, %s2005_s23   ;;  %s1651_s22 = sphi %s1708_s22, %s2004_s22   ;;  %s1647_s21 = sphi %s1706_s21, %s2003_s21  }
   0x6   : > { %s1731_s27 = sadd.s32 1, %s1659_s24   ;;  %s108_s28 = sadd.s32 1, %s1655_s23 }
   0x7   : > { %s105_s29 = ssub.s32 %s1659_s24, %s1731_s27  ;;  %p115_p0 = scmp.ne.s32.totalorder %s1655_s23, %s1651_s22 }
   0x8   : > { %p106_p1 = scmp.eq.s32.totalorder %s105_s29, 0  ;;  %p116_p2 = scmp.eq.s32.totalorder %s1659_s24, 0 }
   0x9   : > { %p121_p3 = scmp.ne.s32.totalorder %s1651_s22, %s1647_s21  ;;  %p122_p4 = scmp.eq.s32.totalorder %s1727_s25, 0 }
   0xa   : > { %s1743_s30 = scalar_select %p106_p1, %s1655_s23, %s108_s28  }
   0xb   : > { %p1745_p5 = por %p116_p2, %p115_p0  ;;  %p1749_p6 = por %p122_p4, %p121_p3 }
   0xc   : > { %p166_p7 = scmp.eq.s32.totalorder %s1727_s25, 1  ;;  %p172_p8 = scmp.eq.s32.totalorder %s1279_s26, 1 }
   0xd   : > { %p1503_p10 = scmp.lt.s32.totalorder %s1659_s24, 2  ;;  %s245_s11 = sand.u32 1, %s1655_s23  }
   0xe   : > { %p1756_p11 = por %p166_p7, %p115_p0  ;;  %p1760_p12 = por %p172_p8, %p121_p3 }
   0xf   : > { %s1370_s12 = sshll.u32 %s1659_s24, 9  ;;  %s1282_s13 = sshll.u32 %s245_s11, 5 }
  0x10   : > { %s1997_s9 = scalar_select %p1756_p11, 1, 0 }
  0x11   : > { %s1998_s10 = scalar_select %p1760_p12, 1, 0 }
  0x12   : > { %s1769_s16 = scalar_lea.hbm %s1990_s3, %s1370_s12  ;;  %s249_s17 = scalar_lea.vmem [#allocation2], %s1282_s13 }
  0x13   : > { %s256_s18 = sshll.u32 %s249_s17, 4  ;;  %p1773_p13 = pnand %p1503_p10, %p1745_p5  ;;  %s1777_s18 = int_to_ptr.vmem [resolvable:$true] %s256_s18 }
  0x14   : > { %s1779_s20 = scalar_lea.sflag [#allocation3], %s245_s11  ;;  %s1563_s26 = scalar_lea.hbm %s1769_s16, 512 }
  0x15   : > { %p1564_p0 = scmp.ne.s32.totalorder %s1769_s16, %s1563_s26  ;;  %p1565_p1 = pneg %p1773_p13 }
  0x16   : > { %s1568_s7 = scalar_lea.hbm %s1990_s3, 1024  ;;  %p1569_p4 = scmp.lt.u32.totalorder %s1769_s16, %s1990_s3 }
  0x17   : > { %p1566_p2 = pnand %p1565_p1, %p1564_p0  ;;  %p1570_p5 = scmp.lt.u32.totalorder %s1568_s7, %s1563_s26 }
  0x18   : > { %p1572_p8 = scmp.lt.u32.totalorder %s1563_s26, %s1769_s16 }
  0x19   : > { %p1567_p3 = pneg %p1566_p2  ;;  %p1571_p7 = por %p1570_p5, %p1569_p4 }
  0x1b   : > { %p1573_p10 = por %p1572_p8, %p1571_p7 }
  0x1d   : > { %p1574_p9 = pnand %p1573_p10, %p1567_p3 }
  0x1f   : > { %1577 = shalt.err (!%p1574_p9)
}
  0x20   : > { %s1578_s11 = scalar_lea.vmem %s1777_s18, 512  ;;  %s1661_s14 = smov [#allocation2]  }
  0x21   : > { %p1579_p0 = scmp.ne.s32.totalorder %s1777_s18, %s1578_s11  ;;  %s1583_s15 = sshll.u32 %s1661_s14, 4  ;;  %s1584_s15 = int_to_ptr.vmem [resolvable:$false] %s1583_s15 }
  0x22   : > { %s1585_s17 = scalar_lea.vmem %s1584_s15, 1024  ;;  %p1586_p11 = scmp.lt.s32.totalorder %s1777_s18, %s1584_s15 }
  0x23   : > { %p1581_p2 = pnand %p1579_p0, %p1565_p1  ;;  %p1587_p4 = scmp.lt.s32.totalorder %s1585_s17, %s1578_s11 }
  0x25   : > { %p1582_p12 = pneg %p1581_p2  ;;  %p1588_p5 = por %p1587_p4, %p1586_p11 }
  0x27   : > { %p1589_p7 = pnand %p1588_p5, %p1582_p12 }
  0x29   : > { %1592 = shalt.err (!%p1589_p7)
}
  0x2a   : > { %s1662_s26 = smov 256   ;;  %s1663_s28 = smov 16  }
  0x2b   : > { %1498 = dma.hbm_to_vmem [thread:$0]  (!%p1773_p13), %s1769_s16, 512, %s1777_s18, %s1779_s20, %s1662_s26, %s1662_s26, %s1663_s28  }
  0x2c   : > { %p1285_p9 = scmp.ge.s32.totalorder %s1659_s24, 1  ;;  %p264_p1 = scmp.lt.s32.totalorder %s1659_s24, 3 }
  0x2e   : > { %p265_p3 = pnand %p1285_p9, %p264_p1 }
  0x2f   : > { %s1810_s29 = sand.u32 (!%p265_p3), 1, %s1651_s22  }
  0x30   : > { %268 = sbr.rel (%p265_p3) target bundleno = 600 (0x258), region = 40  ;;  %s1286_s7 = sshll.u32 (!%p265_p3), %s1810_s29, 5 }
  0x31   : > { %s271_s12 = scalar_lea.sflag (!%p265_p3), [#allocation3], %s1810_s29  ;;  %s1816_s13 = scalar_lea.vmem (!%p265_p3), [#allocation2], %s1286_s7 }
  0x37   : > { %1638 = dma.done.wait (%p1749_p6), %s271_s12, 512  }
  0x38   : > { %1640 = vsyncadd (%p1749_p6), %s271_s12, 4294966784  ;;  %p323_p11 = scmp.lt.s32.totalorder %s1727_s25, 1  ;;  %s1664_s12 = smov 127   ;;  %vm407_vm0 = vcmask 130048   ;;  %v1545_v15 = vld [vmem:[%s1991_s4 + $0x10] sm:$0xff]   ;;  %v1546_v16 = vld [vmem:[%s1991_s4 + $0x18] sm:$0xff]   ;;  %v344_v54 = vlaneseq }
  0x39   : > { %1405 = vmatprep.mubr.msk.bf16.mxu1 %vm407_vm0, %v1545_v15  ;;  %v385_v17 = vld [vmem:[%s1816_s13] sm:$0xff]  ;;  %v386_v18 = vld [vmem:[%s1816_s13 + $0x10] sm:$0xff]  ;;  %v1548_v23 = vld [vmem:[%s1991_s4 + $0x48] sm:$0xff]   ;;  %s1666_s15 = smov 117   ;;  %vm549_vm1 = vcmask 1039360   ;;  %vm860_vm2 = vcmask 965632  }
  0x3a   : > { %s324_s16 = scalar_select %p323_p11, %s1727_s25, 1  ;;  %v387_v21 = vpack.c.bf16 %v386_v18, %v385_v17  ;;  %v1547_v22 = vld [vmem:[%s1991_s4 + $0x40] sm:$0xff]   ;;  %v1551_v25 = vld [vmem:[%s1991_s4 + $0x50] sm:$0xff]   ;;  %v1550_v27 = vld [vmem:[%s1991_s4 + $0x8] sm:$0xff]   ;;  %vm1023_vm3 = vcmask 957440   ;;  %v345_v55 = vand.u32 127, %v344_v54 }
  0x3b   : > { %1429 = vmatprep.mubr.msk.bf16.mxu0 %vm407_vm0, %v1547_v22  ;;  %v1549_v24 = vld [vmem:[%s1991_s4] sm:$0xff]   ;;  %v1552_v34 = vld [vmem:[%s1991_s4 + $0x58] sm:$0xff]   ;;  %v1554_v40 = vld [vmem:[%s1991_s4 + $0x28] sm:$0xff]   ;;  %s315_s14 = scalar_lea.vmem [#allocation5], %s1286_s7  ;;  %p2000_p12 = scmp.ne.s32.totalorder %s1997_s9, 0 }
  0x3c   : > { %s1824_s18 = sshll.u32 %s324_s16, 5  ;;  %s1665_s16 = smov 118   ;;  %1427 = vmatprep.subr.bf16.mxu0 %v387_v21  ;;  %v1553_v28 = vld [vmem:[%s1991_s4 + $0x20] sm:$0xff]   ;;  %v1557_v41 = vld [vmem:[%s1991_s4 + $0x30] sm:$0xff]   ;;  %v1556_v45 = vld [vmem:[%s1991_s4 + $0x68] sm:$0xff]   ;;  %vm363_vm8 = vcmp.lt.s32.totalorder %v345_v55, 78 }
  0x3d   : > { %s337_s11 = scalar_lea.vmem %s1989_s2, %s1824_s18  ;;  %s327_s17 = scalar_lea.vmem %s1987_s0, %s1824_s18  ;;  %1428 = vmatpush3.bf16.msra.mxu0 %v387_v21  ;;  %v1555_v37 = vld [vmem:[%s1991_s4 + $0x60] sm:$0xff]   ;;  %v1559_v48 = vld [vmem:[%s1991_s4 + $0x70] sm:$0xff]   ;;  %v1558_v50 = vld [vmem:[%s1991_s4 + $0x38] sm:$0xff]   ;;  %v1927_v56 = vmul.u32.u64.low 3435973837, %v345_v55  ;;  %v1928_v57 = vmul.u32.u64.high 3435973837, %v345_v55, %v1927_v56 }
  0x3e   : > { %s332_s28 = scalar_lea.vmem %s1988_s1, %s1824_s18  ;;  %v379_v0 = vld [vmem:[%s337_s11] sm:$0xff]  ;;  %v381_v1 = vld [vmem:[%s337_s11 + $0x10] sm:$0xff]  ;;  %v380_v5 = vld [vmem:[%s337_s11 + $0x8] sm:$0xff]  ;;  %s1142_s7 = sshll.u32 %s315_s14, 4  ;;  %s1933_s7 = int_to_ptr.vmem [resolvable:$true] %s1142_s7 }
  0x3f   : > { %v367_v2 = vld [vmem:[%s327_s17] sm:$0xff]  ;;  %v1838_v3 = vpack.c.bf16 %v381_v1, %v379_v0  ;;  %v369_v4 = vld [vmem:[%s327_s17 + $0x10] sm:$0xff]  ;;  %v382_v6 = vld [vmem:[%s337_s11 + $0x18] sm:$0xff]  ;;  %v352_v58 = vshrl.u32 %v1928_v57, 3  ;;  %s1593_s8 = scalar_lea.vmem %s1933_s7, 512  ;;  %s1668_s13 = smov [#allocation5]  }
  0x40   : > { %v371_v7 = vpack.c.bf16 %v369_v4, %v367_v2  ;;  %v368_v8 = vld [vmem:[%s327_s17 + $0x8] sm:$0xff]  ;;  %v370_v9 = vld [vmem:[%s327_s17 + $0x18] sm:$0xff]  ;;  %v373_v10 = vld [vmem:[%s332_s28] sm:$0xff]  ;;  %v384_v11 = vpack.c.bf16 %v382_v6, %v380_v5  ;;  %1430 = vmatmul.mubr.msk.bf16.vlgmr.msra.gmra.mrb[0].mxu0 %vm407_vm0, %v1548_v23  ;;  %p1594_p6 = scmp.ne.s32.totalorder %s1933_s7, %s1593_s8  ;;  %s1597_s19 = sshll.u32 %s1668_s13, 4  ;;  %s1598_s19 = int_to_ptr.vmem [resolvable:$false] %s1597_s19 }
  0x41   : > { %776 = vrot.lane.b32.xlu0 %v1838_v3, %s1664_s12  ;;  %v375_v12 = vld [vmem:[%s332_s28 + $0x10] sm:$0xff]  ;;  %v372_v13 = vpack.c.bf16 %v370_v9, %v368_v8  ;;  %v374_v19 = vld [vmem:[%s332_s28 + $0x8] sm:$0xff]  ;;  %v376_v20 = vld [vmem:[%s332_s28 + $0x18] sm:$0xff]  ;;  %1435 = vmatprep.mubr.msk.bf16.mxu0 %vm407_vm0, %v1551_v25  ;;  %v353_v59 = vmul.u32 10, %v352_v58  ;;  %s1599_s28 = scalar_lea.vmem %s1598_s19, 1024  ;;  %p1600_p10 = scmp.lt.s32.totalorder %s1933_s7, %s1598_s19 }
  0x42   : > { %856 = vrot.lane.b32.xlu1 %v371_v7, %s1665_s16  ;;  %v377_v14 = vpack.c.bf16 %v375_v12, %v373_v10  ;;  %v378_v26 = vpack.c.bf16 %v376_v20, %v374_v19  ;;  %v1560_v51 = vld [vmem:[%s1991_s4 + $0x78] sm:$0xff]   ;;  %v1561_v52 = vld [vmem:[%s1991_s4 + $0x80] sm:$0xff]   ;;  %v1562_v53 = vld [vmem:[%s1991_s4 + $0x88] sm:$0xff]   ;;  %p1595_p13 = pnand %p1594_p6, %p2000_p12  ;;  %p1601_p0 = scmp.lt.s32.totalorder %s1599_s28, %s1593_s8 }
  0x43   : > { %v354_v61 = vsub.s32 %v345_v55, %v353_v59 }
  0x44   : > { %1403 = vmatprep.subr.bf16.mxu1 %v377_v14  ;;  %p1596_p8 = pneg %p1595_p13  ;;  %p1602_p2 = por %p1601_p0, %p1600_p10 }
  0x45   : > { %778 = vrot.lane.b32.xlu0 %v384_v11, %s1664_s12  ;;  %1404 = vmatpush3.bf16.msra.mxu1 %v377_v14  ;;  %vm357_vm4 = vcmp.ne.s32.totalorder %v354_v61, 0  ;;  %vm358_vm5 = vcmp.lt.s32.totalorder %v354_v61, 0  ;;  %v360_v1 = vadd.s32 10, %v354_v61 }
  0x46   : > { %858 = vrot.lane.b32.xlu1 %v372_v13, %s1665_s16  ;;  %1409 = vmatprep.subr.bf16.mxu1 %v371_v7  ;;  %vm359_vm6 = vmand %vm358_vm5, %vm357_vm4  ;;  %p1603_p4 = pnand %p1602_p2, %p1596_p8 }
  0x47   : > { %v361_v2 = vsel %vm359_vm6, %v360_v1, %v354_v61 }
  0x48   : > { %1406 = vmatmul.mubr.msk.bf16.vlgmr.msra.gmra.mrb[0].mxu1 %vm407_vm0, %v1546_v16  ;;  %vm362_vm7 = vcmp.lt.s32.totalorder %v361_v2, 8 }
  0x49   : > { %545 = vrot.lane.b32.xlu0 %v371_v7, %s1664_s12  ;;  %1410 = vmatpush3.bf16.msra.mxu1 %v371_v7  ;;  %vm364_vm9 = vmand %vm362_vm7, %vm363_vm8 }
  0x4a   : > { %547 = vrot.lane.b32.xlu1 %v372_v13, %s1664_s12  ;;  %1411 = vmatprep.mubr.msk.bf16.mxu1 %vm407_vm0, %v1549_v24 }
  0x4d   : > { %939 = vrot.lane.b32.xlu0 %v377_v14, %s1665_s16 }
  0x4e   : > { %941 = vrot.lane.b32.xlu1 %v378_v26, %s1665_s16  ;;  %s1124_s16 = scalar_lea.sflag [#allocation4], %s1810_s29 }
  0x51   : > { %1019 = vrot.lane.b32.xlu0 %v371_v7, %s1666_s15 }
  0x52   : > { %1021 = vrot.lane.b32.xlu1 %v372_v13, %s1666_s15  ;;  %s1375_s15 = sshll.u32 %s1727_s25, 9 }
  0x53   : > { %s1939_s12 = scalar_lea.hbm %s1992_s5, %s1375_s15 }
  0x54   : > { %1412 = vmatmul.mubr.msk.bf16.vlgmr.msra.gmra.mrb[0].mxu1 %vm407_vm0, %v1550_v27 }
  0x55   : > { %1417 = vmatprep.mubr.msk.bf16.mxu1 %vm407_vm0, %v1553_v28 }
  0xb3   : > { %v777_v29 = vpop.permute.xlu0 %776 }
  0xb4   : > { %v857_v30 = vpop.permute.xlu1 %856 }
  0xb7   : > { %v779_v31 = vpop.permute.xlu0 %778 }
  0xb8   : > { %v859_v32 = vpop.permute.xlu1 %858  ;;  %v780_v33 = vsel %vm549_vm1, %v777_v29, %v779_v31 }
  0xb9   : > { %1433 = vmatprep.subr.bf16.mxu0 %v780_v33  ;;  %v861_v35 = vsel %vm860_vm2, %v857_v30, %v859_v32 }
  0xba   : > { %1434 = vmatpush3.bf16.msra.mxu0 %v780_v33 }
  0xbb   : > { %v546_v36 = vpop.permute.xlu0 %545  ;;  %1439 = vmatprep.subr.bf16.mxu0 %v861_v35 }
  0xbc   : > { %v548_v38 = vpop.permute.xlu1 %547 }
  0xbd   : > { %v550_v39 = vsel %vm549_vm1, %v546_v36, %v548_v38  ;;  %1436 = vmatmul.mubr.msk.bf16.vlgmr.msra.gmra.mrb[0].mxu0 %vm407_vm0, %v1552_v34 }
  0xbe   : > { %1415 = vmatprep.subr.bf16.mxu1 %v550_v39  ;;  %1440 = vmatpush3.bf16.msra.mxu0 %v861_v35 }
  0xbf   : > { %1416 = vmatpush3.bf16.msra.mxu1 %v550_v39  ;;  %1441 = vmatprep.mubr.msk.bf16.mxu0 %vm407_vm0, %v1555_v37  ;;  %v940_v42 = vpop.permute.xlu0 %939 }
  0xc0   : > { %1421 = vmatprep.subr.bf16.mxu1 %v1838_v3  ;;  %v942_v43 = vpop.permute.xlu1 %941 }
  0xc1   : > { %v943_v44 = vsel %vm860_vm2, %v940_v42, %v942_v43 }
  0xc2   : > { %1418 = vmatmul.mubr.msk.bf16.vlgmr.msra.gmra.mrb[0].mxu1 %vm407_vm0, %v1554_v40  ;;  %1445 = vmatprep.subr.bf16.mxu0 %v943_v44 }
  0xc3   : > { %1422 = vmatpush3.bf16.msra.mxu1 %v1838_v3  ;;  %1423 = vmatprep.mubr.msk.bf16.mxu1 %vm407_vm0, %v1557_v41  ;;  %v1020_v46 = vpop.permute.xlu0 %1019  ;;  %v1667_v3 = vmov 0.0  }
  0xc4   : > { %v1022_v47 = vpop.permute.xlu1 %1021  ;;  %v1296_v4 = vsel %vm364_vm9, 1.0, %v1667_v3 }
  0xc5   : > { %v1024_v49 = vsel %vm1023_vm3, %v1020_v46, %v1022_v47 }
  0xc9   : > { %1442 = vmatmul.mubr.msk.bf16.vlgmr.msra.gmra.mrb[0].mxu0 %vm407_vm0, %v1556_v45 }
  0xca   : > { %1446 = vmatpush3.bf16.msra.mxu0 %v943_v44  ;;  %1447 = vmatprep.mubr.msk.bf16.mxu0 %vm407_vm0, %v1559_v48 }
  0xcb   : > { %1451 = vmatprep.subr.bf16.mxu0 %v1024_v49 }
  0xce   : > { %1424 = vmatmul.mubr.msk.bf16.vlgmr.msra.gmra.mrb[0].mxu1 %vm407_vm0, %v1558_v50 }
  0xd5   : > { %1448 = vmatmul.mubr.msk.bf16.vlgmr.msra.gmra.mrb[0].mxu0 %vm407_vm0, %v1560_v51 }
  0xd6   : > { %1452 = vmatpush3.bf16.msra.mxu0 %v1024_v49  ;;  %1453 = vmatprep.mubr.msk.bf16.mxu0 %vm407_vm0, %v1561_v52 }
  0xe1   : > { %1454 = vmatmul.mubr.msk.bf16.vlgmr.msra.gmra.mrb[0].mxu0 %vm407_vm0, %v1562_v53 }
 0x1a1   : > { %v1425_v60 = vpop.f32.mrb[0].mxu1 }
 0x1a2   : > { %v666_v62 = vpop.f32.mrb[1].mxu1 }
 0x1a3   : > { %v1426_v63 = vpop.f32.mrb[2].mxu1 }
 0x1a4   : > { %v669_v0 = vpop.f32.mrb[3].mxu1 }
 0x1b4   : > { %v1455_v5 = vpop.f32.mrb[0].mxu0 }
 0x1b5   : > { %v1457_v6 = vadd.f32 %v1455_v5, %v1425_v60  ;;  %v1066_v7 = vpop.f32.mrb[1].mxu0 }
 0x1b6   : > { %v1458_v8 = vadd.f32 %v1066_v7, %v666_v62  ;;  %v1456_v9 = vpop.f32.mrb[2].mxu0 }
 0x1b7   : > { %v1087_v10 = vmul.f32 %v1457_v6, %v1296_v4  ;;  %v1459_v11 = vadd.f32 %v1456_v9, %v1426_v63  ;;  %v1069_v12 = vpop.f32.mrb[3].mxu0 }
 0x1b8   : > { %v1085_v13 = vmul.f32 %v1458_v8, %v1296_v4  ;;  %v1460_v14 = vadd.f32 %v1069_v12, %v669_v0 }
 0x1b9   : > { %1091 = vst [vmem:[%s315_s14 + $0x10] sm:$0xff] %v1087_v10  ;;  %v1088_v15 = vmul.f32 %v1459_v11, %v1296_v4  ;;  %1097 = vadd.xlane.f32.xlu0 %v1087_v10  ;;  %v1108_v18 = vmul.f32 %v1087_v10, %v1087_v10 }
 0x1ba   : > { %1089 = vst [vmem:[%s315_s14] sm:$0xff] %v1085_v13  ;;  %v1086_v16 = vmul.f32 %v1460_v14, %v1296_v4  ;;  %v1106_v17 = vmul.f32 %v1085_v13, %v1085_v13 }
 0x1bb   : > { %1092 = vst [vmem:[%s315_s14 + $0x18] sm:$0xff] %v1088_v15  ;;  %v1109_v20 = vmul.f32 %v1088_v15, %v1088_v15 }
 0x1bc   : > { %1090 = vst [vmem:[%s315_s14 + $0x8] sm:$0xff] %v1086_v16  ;;  %1095 = vadd.xlane.f32.xlu1 %v1086_v16  ;;  %v1107_v19 = vmul.f32 %v1086_v16, %v1086_v16 }
 0x1bd   : > { %1093 = vadd.xlane.f32.xlu0 %v1085_v13 }
 0x1c0   : > { %1110 = vadd.xlane.f32.xlu1 %v1106_v17 }
 0x1c1   : > { %1099 = vadd.xlane.f32.xlu0 %v1088_v15 }
 0x1c4   : > { %1114 = vadd.xlane.f32.xlu1 %v1108_v18 }
 0x1c5   : > { %1112 = vadd.xlane.f32.xlu0 %v1107_v19 }
 0x1c9   : > { %1116 = vadd.xlane.f32.xlu0 %v1109_v20 }
 0x1ca   : > { %1606 = shalt.err (!%p1603_p4)
}
 0x1cb   : > { %s1607_s25 = scalar_lea.hbm %s1939_s12, 512  ;;  %s1611_s14 = scalar_lea.hbm %s1992_s5, 1024 }
 0x1cc   : > { %p1608_p5 = scmp.ne.s32.totalorder %s1939_s12, %s1607_s25  ;;  %p1612_p1 = scmp.lt.u32.totalorder %s1939_s12, %s1992_s5 }
 0x1cd   : > { %p1613_p3 = scmp.lt.u32.totalorder %s1611_s14, %s1607_s25  ;;  %p1615_p6 = scmp.lt.u32.totalorder %s1607_s25, %s1939_s12 }
 0x1ce   : > { %p1609_p7 = pnand %p1608_p5, %p2000_p12 }
 0x1cf   : > { %p1614_p11 = por %p1613_p3, %p1612_p1 }
 0x1d0   : > { %p1610_p9 = pneg %p1609_p7 }
 0x1d1   : > { %p1616_p13 = por %p1615_p6, %p1614_p11 }
 0x1d3   : > { %p1617_p8 = pnand %p1616_p13, %p1610_p9 }
 0x1d5   : > { %1620 = shalt.err (!%p1617_p8)
}
 0x1d6   : > { %s1669_s26 = smov 128   ;;  %s1670_s8 = smov 8   ;;  %vm1101_vm10 = vcmask 7168   ;;  %vm1118_vm11 = vcmask 15368  }
 0x1d7   : > { %1493 = dma.vmem_to_hbm [thread:$0]  (%p2000_p12), %s1933_s7, 512, %s1939_s12, %s1124_s16, %s1669_s26, %s1669_s26, %s1670_s8  }
 0x1d8   : > { %s342_s28 = scalar_lea.vmem %s1993_s6, %s1824_s18 }
 0x246   : > { %v1098_v21 = vpop.xlane.xlu0 %1097 }
 0x247   : > { %1104 = vst.msk [vmem:[%s342_s28 + $0x10] sm:$0xff] %vm1101_vm10, %v1098_v21 }
 0x249   : > { %v1096_v22 = vpop.xlane.xlu1 %1095 }
 0x24a   : > { %1103 = vst.msk [vmem:[%s342_s28 + $0x8] sm:$0xff] %vm1101_vm10, %v1096_v22  ;;  %v1094_v23 = vpop.xlane.xlu0 %1093 }
 0x24b   : > { %1102 = vst.msk [vmem:[%s342_s28] sm:$0xff] %vm1101_vm10, %v1094_v23 }
 0x24d   : > { %v1111_v24 = vpop.xlane.xlu1 %1110 }
 0x24e   : > { %1119 = vst.msk [vmem:[%s342_s28] sm:$0xff] %vm1118_vm11, %v1111_v24  ;;  %v1100_v25 = vpop.xlane.xlu0 %1099 }
 0x24f   : > { %1105 = vst.msk [vmem:[%s342_s28 + $0x18] sm:$0xff] %vm1101_vm10, %v1100_v25 }
 0x251   : > { %v1115_v26 = vpop.xlane.xlu1 %1114 }
 0x252   : > { %1121 = vst.msk [vmem:[%s342_s28 + $0x10] sm:$0xff] %vm1118_vm11, %v1115_v26  ;;  %v1113_v27 = vpop.xlane.xlu0 %1112 }
 0x253   : > { %1120 = vst.msk [vmem:[%s342_s28 + $0x8] sm:$0xff] %vm1118_vm11, %v1113_v27 }
 0x256   : > { %v1117_v28 = vpop.xlane.xlu0 %1116 }
 0x257   : > { %1122 = vst.msk [vmem:[%s342_s28 + $0x18] sm:$0xff] %vm1118_vm11, %v1117_v28 }
 0x258 PF: > { %s1160_s9 = sand.u32 1, %s1647_s21   ;;  %p2001_p12 = scmp.ne.s32.totalorder %s1998_s10, 0 }
 0x259   : > { %p2002_p10 = scmp.ge.s32.totalorder %s1659_s24, 2  ;;  %s1161_s29 = scalar_lea.sflag [#allocation4], %s1160_s9 }
 0x25b   : > { %p1500_p0 = pnand %p2002_p10, %p2001_p12 }
 0x25d   : > { %1642 = dma.done.wait (!%p1500_p0), %s1161_s29, 512  }
 0x25e   : > { %1644 = vsyncadd (!%p1500_p0), %s1161_s29, 4294966784  ;;  %p20_p2 = scmp.ge.s32.totalorder %s1731_s27, 4   ;;  %s2003_s21 = smov %s1651_s22 }
 0x25f   : > { %s2004_s22 = smov %s1655_s23  ;;  %s2005_s23 = smov %s1743_s30 }
 0x260   : > { %s2006_s24 = smov %s1731_s27  ;;  %22 = sbr.rel (!%p20_p2) target bundleno = 5 (0x5), region = 114 }
 0x267   :  { %1174 = vsyncpa [#allocation3], 1 }
 0x268   :  { %1176 = vsyncpa [#allocation3 + $0x1], 1 }
 0x269   :  { %1177 = vsyncpa [#allocation4], 1 }
 0x26a   :  { %1179 = vsyncpa [#allocation4 + $0x1], 1 }

</bundles_post_ra>
